<compile_context>
chip_gen: v6e
topology: v6e:2x2x1
jax: 0.10.0
libtpu: 0.0.40
codegen_flags: <defaults>
</compile_context>

<pallas_src>
import jax
import jax.numpy as jnp
from jax.experimental import pallas as pl
from jax.experimental.pallas import tpu as pltpu


def mlp_base_kernel(x_ref, w1_ref, b1_ref, w2_ref, b2_ref, wc_ref, bc_ref,
                    critic_ref, feat_ref):
    # Layer 1: Linear + ReLU (bf16 MXU matmul, f32 accumulation + elementwise)
    h1 = jnp.dot(x_ref[...].astype(jnp.bfloat16), w1_ref[...],
                 preferred_element_type=jnp.float32)
    h1 = jnp.maximum(h1 + b1_ref[...], 0.0)

    # Layer 2: Linear + ReLU
    h2 = jnp.dot(h1.astype(jnp.bfloat16), w2_ref[...],
                 preferred_element_type=jnp.float32)
    h2 = jnp.maximum(h2 + b2_ref[...], 0.0)

    # Critic head: N=1 linear done as a VPU multiply + XLU lane reduction
    # (keeps the tiny head off the MXU, avoids a lane-padded (256,1) tile).
    critic = jnp.sum(h2 * wc_ref[...], axis=-1, keepdims=True) + bc_ref[...]

    feat_ref[...] = h2.astype(feat_ref.dtype)
    critic_ref[...] = critic.astype(critic_ref.dtype)


def mlp_base_forward(x, w1, b1, w2, b2, wc_row, bc, *, block_b=512):
    """Fused MLPBase forward with a batch grid and VMEM-resident weights.

    x:       [B, F]   float32
    w1:      [F, H1]  bfloat16 (pre-transposed vs. torch's [out, in])
    b1:      [1, H1]  float32
    w2:      [H1, H2] bfloat16
    b2:      [1, H2]  float32
    wc_row:  [1, H2]  float32   (critic weight stored as a row)
    bc:      [1, 1]   float32
    """
    B, F = x.shape
    H1 = w1.shape[1]
    H2 = w2.shape[1]

    # Batch tile: multiple of 8 (f32 sublane); weights are reused across steps.
    tb = min(block_b, max(B, 8))
    tb = max(8, (tb // 8) * 8)
    pad = (-B) % tb
    if pad:
        x = jnp.pad(x, ((0, pad), (0, 0)))
    Bp = B + pad
    grid = (Bp // tb,)

    row_spec = lambda shape: pl.BlockSpec(shape, lambda i: (i, 0))   # tiled over batch
    rep_spec = lambda shape: pl.BlockSpec(shape, lambda i: (0, 0))   # VMEM-resident

    critic, feat = pl.pallas_call(
        mlp_base_kernel,
        grid=grid,
        out_shape=(
            jax.ShapeDtypeStruct((Bp, 1), x.dtype),    # critic value
            jax.ShapeDtypeStruct((Bp, H2), x.dtype),   # hidden features
        ),
        in_specs=[
            row_spec((tb, F)),
            rep_spec((F, H1)),
            rep_spec((1, H1)),
            rep_spec((H1, H2)),
            rep_spec((1, H2)),
            rep_spec((1, H2)),
            rep_spec((1, 1)),
        ],
        out_specs=(
            row_spec((tb, 1)),
            row_spec((tb, H2)),
        ),
        compiler_params=pltpu.CompilerParams(
            dimension_semantics=("parallel",)),
    )(x, w1, b1, w2, b2, wc_row, bc)

    if pad:
        critic = critic[:B]
        feat = feat[:B]
    return critic, feat


def make_params(key, input_sz, hidden_sizes):
    """Deterministic synthetic parameters (shapes match the nn.Linear layers)."""
    keys = jax.random.split(key, 3)
    h1, h2 = hidden_sizes
    # Stored as [in, out] (transposed relative to torch's [out, in]); the two
    # big matmul weights live in bf16, biases and the critic row stay f32.
    w1 = (jax.random.normal(keys[0], (input_sz, h1), jnp.float32) * 0.05
          ).astype(jnp.bfloat16)
    b1 = jnp.zeros((1, h1), jnp.float32)
    w2 = (jax.random.normal(keys[1], (h1, h2), jnp.float32) * 0.05
          ).astype(jnp.bfloat16)
    b2 = jnp.zeros((1, h2), jnp.float32)
    wc_row = jax.random.normal(keys[2], (1, h2), jnp.float32) * 0.05
    bc = jnp.zeros((1, 1), jnp.float32)
    return w1, b1, w2, b2, wc_row, bc


if __name__ == "__main__":
    key = jax.random.PRNGKey(0)
    k_x, k_p = jax.random.split(key)

    B = 16
    INPUT_SZ = 128
    HIDDEN_SIZES = [512, 256]   # matches MLPBase default hidden_sizes

    x = jax.random.normal(k_x, (B, INPUT_SZ), jnp.float32)
    params = make_params(k_p, INPUT_SZ, HIDDEN_SIZES)

    # Small batch tile (8) so the demo exercises a multi-step grid; real
    # workloads should use the default block_b=512 (or larger, multiple of 256).
    fwd = jax.jit(lambda xx, *p: mlp_base_forward(xx, *p, block_b=8))
    critic, feats = fwd(x, *params)
    jax.block_until_ready((critic, feats))

    # Reference in plain JAX with the same bf16 operand rounding.
    w1, b1, w2, b2, wc_row, bc = params
    x_b = x.astype(jnp.bfloat16).astype(jnp.float32)
    w1_f = w1.astype(jnp.float32)
    w2_f = w2.astype(jnp.float32)
    h1_ref = jnp.maximum(x_b @ w1_f + b1, 0.0)
    h2_ref = jnp.maximum(
        h1_ref.astype(jnp.bfloat16).astype(jnp.float32) @ w2_f + b2, 0.0)
    critic_ref = jnp.sum(h2_ref * wc_row, axis=-1, keepdims=True) + bc
    # Critic consistency against the kernel's own features (decouples the two
    # heads from matmul accumulation-order noise).
    critic_from_feats = jnp.sum(feats * wc_row, axis=-1, keepdims=True) + bc

    assert critic.shape == (B, 1) and feats.shape == (B, HIDDEN_SIZES[-1])
    assert jnp.allclose(feats, h2_ref, atol=1e-2, rtol=1e-2)
    assert jnp.allclose(critic, critic_ref, atol=1e-2, rtol=1e-2)
    assert jnp.allclose(critic, critic_from_feats, atol=1e-3, rtol=1e-3)

    print("KERNEL_OK")
</pallas_src>

<mosaic_0001>
module attributes {stable_mosaic.version = 11 : i64} {
  func.func @mlp_base_kernel(%arg0: i32, %arg1: memref<8x128xf32, #tpu.memory_space<vmem>>, %arg2: memref<128x512xbf16, #tpu.memory_space<vmem>>, %arg3: memref<1x512xf32, #tpu.memory_space<vmem>>, %arg4: memref<512x256xbf16, #tpu.memory_space<vmem>>, %arg5: memref<1x256xf32, #tpu.memory_space<vmem>>, %arg6: memref<1x256xf32, #tpu.memory_space<vmem>>, %arg7: memref<1x1xf32, #tpu.memory_space<vmem>>, %arg8: memref<8x1xf32, #tpu.memory_space<vmem>>, %arg9: memref<8x256xf32, #tpu.memory_space<vmem>>) attributes {dimension_semantics = [#tpu.dimension_semantics<parallel>], iteration_bounds = array<i64: 2>, scalar_prefetch = 0 : i64, scratch_operands = 0 : i64, tpu.core_type = #tpu.core_type<tc>, window_params = [{transform_indices = @transform_0, window_bounds = array<i64: 8, 128>}, {pipeline_mode = #tpu.pipeline_mode<synchronous>, transform_indices = @transform_1, window_bounds = array<i64: 128, 512>}, {pipeline_mode = #tpu.pipeline_mode<synchronous>, transform_indices = @transform_2, window_bounds = array<i64: 1, 512>}, {pipeline_mode = #tpu.pipeline_mode<synchronous>, transform_indices = @transform_3, window_bounds = array<i64: 512, 256>}, {pipeline_mode = #tpu.pipeline_mode<synchronous>, transform_indices = @transform_4, window_bounds = array<i64: 1, 256>}, {pipeline_mode = #tpu.pipeline_mode<synchronous>, transform_indices = @transform_5, window_bounds = array<i64: 1, 256>}, {pipeline_mode = #tpu.pipeline_mode<synchronous>, transform_indices = @transform_6, window_bounds = array<i64: 1, 1>}, {transform_indices = @transform_7, window_bounds = array<i64: 8, 1>}, {transform_indices = @transform_8, window_bounds = array<i64: 8, 256>}]} {
    %c0 = arith.constant 0 : index
    %c0_0 = arith.constant 0 : index
    %0 = vector.load %arg1[%c0, %c0_0] : memref<8x128xf32, #tpu.memory_space<vmem>>, vector<8x128xf32>
    %1 = arith.truncf %0 : vector<8x128xf32> to vector<8x128xbf16>
    %c0_1 = arith.constant 0 : index
    %c0_2 = arith.constant 0 : index
    %2 = vector.load %arg2[%c0_1, %c0_2] : memref<128x512xbf16, #tpu.memory_space<vmem>>, vector<128x512xbf16>
    %cst = arith.constant dense<0.000000e+00> : vector<8x512xf32>
    %3 = tpu.matmul %1, %2, %cst {dimension_numbers = #tpu.dot_dimension_numbers<[1], [0], [0], [1], [0, 0, 1, 1], [], []>} : vector<8x128xbf16>, vector<128x512xbf16>, vector<8x512xf32> -> vector<8x512xf32>
    %c0_3 = arith.constant 0 : index
    %c0_4 = arith.constant 0 : index
    %4 = vector.load %arg3[%c0_3, %c0_4] : memref<1x512xf32, #tpu.memory_space<vmem>>, vector<1x512xf32>
    %5 = vector.broadcast %4 : vector<1x512xf32> to vector<8x512xf32>
    %6 = arith.addf %3, %5 : vector<8x512xf32>
    %cst_5 = arith.constant 0.000000e+00 : f32
    %7 = vector.broadcast %cst_5 : f32 to vector<8x512xf32>
    %8 = arith.maximumf %6, %7 : vector<8x512xf32>
    %9 = arith.truncf %8 : vector<8x512xf32> to vector<8x512xbf16>
    %c0_6 = arith.constant 0 : index
    %c0_7 = arith.constant 0 : index
    %10 = vector.load %arg4[%c0_6, %c0_7] : memref<512x256xbf16, #tpu.memory_space<vmem>>, vector<512x256xbf16>
    %cst_8 = arith.constant dense<0.000000e+00> : vector<8x256xf32>
    %11 = tpu.matmul %9, %10, %cst_8 {dimension_numbers = #tpu.dot_dimension_numbers<[1], [0], [0], [1], [0, 0, 1, 1], [], []>} : vector<8x512xbf16>, vector<512x256xbf16>, vector<8x256xf32> -> vector<8x256xf32>
    %c0_9 = arith.constant 0 : index
    %c0_10 = arith.constant 0 : index
    %12 = vector.load %arg5[%c0_9, %c0_10] : memref<1x256xf32, #tpu.memory_space<vmem>>, vector<1x256xf32>
    %13 = vector.broadcast %12 : vector<1x256xf32> to vector<8x256xf32>
    %14 = arith.addf %11, %13 : vector<8x256xf32>
    %cst_11 = arith.constant 0.000000e+00 : f32
    %15 = vector.broadcast %cst_11 : f32 to vector<8x256xf32>
    %16 = arith.maximumf %14, %15 : vector<8x256xf32>
    %c0_12 = arith.constant 0 : index
    %c0_13 = arith.constant 0 : index
    %17 = vector.load %arg6[%c0_12, %c0_13] : memref<1x256xf32, #tpu.memory_space<vmem>>, vector<1x256xf32>
    %18 = vector.broadcast %17 : vector<1x256xf32> to vector<8x256xf32>
    %19 = arith.mulf %16, %18 : vector<8x256xf32>
    %cst_14 = arith.constant dense<0.000000e+00> : vector<8xf32>
    %20 = vector.multi_reduction <add>, %19, %cst_14 [1] : vector<8x256xf32> to vector<8xf32>
    %21 = vector.shape_cast %20 : vector<8xf32> to vector<8x1xf32>
    %c0_15 = arith.constant 0 : index
    %c0_16 = arith.constant 0 : index
    %22 = vector.load %arg7[%c0_15, %c0_16] : memref<1x1xf32, #tpu.memory_space<vmem>>, vector<1x1xf32>
    %23 = vector.broadcast %22 : vector<1x1xf32> to vector<8x1xf32>
    %24 = arith.addf %21, %23 : vector<8x1xf32>
    %c0_17 = arith.constant 0 : index
    %c0_18 = arith.constant 0 : index
    %25 = vector.load %arg9[%c0_17, %c0_18] : memref<8x256xf32, #tpu.memory_space<vmem>>, vector<8x256xf32>
    tpu.vector_store %arg9[%c0_17, %c0_18], %16 {strides = array<i32>} : memref<8x256xf32, #tpu.memory_space<vmem>>, vector<8x256xf32>,
    %c0_19 = arith.constant 0 : index
    %c0_20 = arith.constant 0 : index
    %26 = vector.load %arg8[%c0_19, %c0_20] : memref<8x1xf32, #tpu.memory_space<vmem>>, vector<8x1xf32>
    tpu.vector_store %arg8[%c0_19, %c0_20], %24 {strides = array<i32>} : memref<8x1xf32, #tpu.memory_space<vmem>>, vector<8x1xf32>,
    return
  }
  func.func @transform_0(%arg0: i32) -> (i32, i32) {
    %c0_i32 = arith.constant 0 : i32
    %c0_i32_0 = arith.constant 0 : i32
    return %arg0, %c0_i32 : i32, i32
  }
  func.func @transform_1(%arg0: i32) -> (i32, i32) {
    %c0_i32 = arith.constant 0 : i32
    %c0_i32_0 = arith.constant 0 : i32
    %c0_i32_1 = arith.constant 0 : i32
    return %c0_i32, %c0_i32_0 : i32, i32
  }
  func.func @transform_2(%arg0: i32) -> (i32, i32) {
    %c0_i32 = arith.constant 0 : i32
    %c0_i32_0 = arith.constant 0 : i32
    %c0_i32_1 = arith.constant 0 : i32
    return %c0_i32, %c0_i32_0 : i32, i32
  }
  func.func @transform_3(%arg0: i32) -> (i32, i32) {
    %c0_i32 = arith.constant 0 : i32
    %c0_i32_0 = arith.constant 0 : i32
    %c0_i32_1 = arith.constant 0 : i32
    return %c0_i32, %c0_i32_0 : i32, i32
  }
  func.func @transform_4(%arg0: i32) -> (i32, i32) {
    %c0_i32 = arith.constant 0 : i32
    %c0_i32_0 = arith.constant 0 : i32
    %c0_i32_1 = arith.constant 0 : i32
    return %c0_i32, %c0_i32_0 : i32, i32
  }
  func.func @transform_5(%arg0: i32) -> (i32, i32) {
    %c0_i32 = arith.constant 0 : i32
    %c0_i32_0 = arith.constant 0 : i32
    %c0_i32_1 = arith.constant 0 : i32
    return %c0_i32, %c0_i32_0 : i32, i32
  }
  func.func @transform_6(%arg0: i32) -> (i32, i32) {
    %c0_i32 = arith.constant 0 : i32
    %c0_i32_0 = arith.constant 0 : i32
    %c0_i32_1 = arith.constant 0 : i32
    return %c0_i32, %c0_i32_0 : i32, i32
  }
  func.func @transform_7(%arg0: i32) -> (i32, i32) {
    %c0_i32 = arith.constant 0 : i32
    %c0_i32_0 = arith.constant 0 : i32
    return %arg0, %c0_i32 : i32, i32
  }
  func.func @transform_8(%arg0: i32) -> (i32, i32) {
    %c0_i32 = arith.constant 0 : i32
    %c0_i32_0 = arith.constant 0 : i32
    return %arg0, %c0_i32 : i32, i32
  }
}

</mosaic_0001>

<bundles_post_ra>
// kernel: _lambda_.1
= control target key start
LH: loop header
LB: loop body
LE: loop exit
PB: predicated region body
PF: predicated region fallthrough
CT: control target
= control target key end

     0   :  { %s2036_s0 = inlined_call_operand.hbm [shape: f32[16,128], index: 0, kind: input, shape index: {}]   ;;  %s2037_s1 = inlined_call_operand.hbm [shape: bf16[128,512], index: 1, kind: input, shape index: {}]   ;;  %s2038_s2 = inlined_call_operand.vmem [shape: f32[1,512], index: 2, kind: input, shape index: {}]   ;;  %s2039_s3 = inlined_call_operand.hbm [shape: bf16[512,256], index: 3, kind: input, shape index: {}]   ;;  %s2040_s4 = inlined_call_operand.vmem [shape: f32[1,256], index: 4, kind: input, shape index: {}]   ;;  %s2041_s5 = inlined_call_operand.vmem [shape: f32[1,256], index: 5, kind: input, shape index: {}]   ;;  %s2042_s6 = inlined_call_operand.<no memory space> [shape: f32[1,1], index: 6, kind: input, shape index: {}]   ;;  %s2043_s7 = inlined_call_operand.vmem [shape: f32[16,1], index: 7, kind: output, shape index: {0}]   ;;  %s2044_s8 = inlined_call_operand.hbm [shape: f32[16,256], index: 8, kind: output, shape index: {1}]  }
   0x1   :  { %2049 = sst [smem:[#allocation13_spill]] %s2037_s1  ;;  %v14_v0 = vstv %s2042_s6 }
   0x2   :  { %2050 = sst [smem:[#allocation14_spill]] %s2039_s3  ;;  %15 = vst [vmem:[#allocation2] sm:$0x1] %v14_v0 }
   0x3   :  { %16 = vsyncpa [#allocation4], 0 }
   0x4   :  { %18 = vsyncpa [#allocation4 + $0x1], 0 }
   0x5   :  { %19 = vsyncpa [#allocation7], 0 }
   0x6   :  { %20 = vsyncpa [#allocation5], 0 }
   0x7   :  { %22 = vsyncpa [#allocation5 + $0x1], 0  ;;  %s1853_s29 = smov 0   ;;  %s1855_s30 = smov 0  }
   0x8   :  { %s1857_s9 = smov 0   ;;  %s1859_s10 = smov 0  }
   0x9 LB: > { %s1874_s6 = sadd.s32 4294967295, %s1794_s10   ;;  %s1314_s11 = sadd.s32 4294967294, %s1794_s10   ;;  %s1794_s10 = sphi %s1859_s10, %s2070_s10   ;;  %s1790_s9 = sphi %s1857_s9, %s2069_s9   ;;  %s1786_s30 = sphi %s1855_s30, %s2068_s30   ;;  %s1782_s29 = sphi %s1853_s29, %s2067_s29  }
   0xa   : > { %p48_p0 = scmp.ne.s32.totalorder %s1786_s30, %s1782_s29  ;;  %p2045_p1 = scmp.eq.s32.totalorder %s1874_s6, 0 }
   0xb   : > { %p230_p3 = scmp.eq.s32.totalorder %s1314_s11, 1  ;;  %p1315_p5 = scmp.ge.s32.totalorder %s1794_s10, 1 }
   0xc   : > { %p1883_p4 = por %p2045_p1, %p48_p0  ;;  %p237_p7 = scmp.lt.s32.totalorder %s1794_s10, 3 }
   0xd   : > { %p1888_p6 = por %p230_p3, %p48_p0  ;;  %s1796_s15 = smov [#allocation6]  }
   0xe   : > { %s2051_s12 = scalar_select %p1883_p4, 1, 0 }
   0xf   : > { %s2052_s13 = scalar_select %p1888_p6, 1, 0 }
  0x10   : > { %p1893_p8 = pnand %p1315_p5, %p237_p7  ;;  %s249_s16 = sshll.u32 %s1796_s15, 4  ;;  %s250_s16 = int_to_ptr.vmem [resolvable:$true] %s249_s16 }
  0x11   : > { %s1797_s18 = smov [#allocation8]   ;;  %s1657_s20 = scalar_lea.vmem %s250_s16, 4096 }
  0x12   : > { %s2053_s14 = scalar_select %p1893_p8, 1, 0 }
  0x13   : > { %p1442_p9 = pneg %p1893_p8  ;;  %s265_s19 = sshll.u32 %s1797_s18, 4  ;;  %s266_s19 = int_to_ptr.vmem [resolvable:$true] %s265_s19 }
  0x14   : > { %p1658_p13 = scmp.ne.s32.totalorder %s250_s16, %s1657_s20  ;;  %p1665_p5 = scmp.lt.s32.totalorder %s250_s16, %s250_s16 }
  0x15   : > { %p1902_p11 = pnand %p1442_p9, %p2045_p1  ;;  %p1666_p7 = scmp.lt.s32.totalorder %s1657_s20, %s1657_s20 }
  0x17   : > { %p1648_p12 = pneg %p1902_p11  ;;  %p1667_p10 = por %p1666_p7, %p1665_p5 }
  0x19   : > { %p1660_p0 = pnand %p1658_p13, %p1648_p12 }
  0x1b   : > { %p1661_p3 = pneg %p1660_p0 }
  0x1d   : > { %p1668_p9 = pnand %p1667_p10, %p1661_p3 }
  0x1f   : > { %1671 = shalt.err (!%p1668_p9)
}
  0x20   : > { %s1798_s21 = smov 256   ;;  %s1799_s22 = smov 16  }
  0x21   : > { %s2055_s1 = sld [smem:[#allocation13_spill]]  ;;  %s1683_s25 = scalar_lea.vmem %s266_s19, 8192 }
  0x22   : > { %p1684_p1 = scmp.ne.s32.totalorder %s266_s19, %s1683_s25  ;;  %p1691_p2 = scmp.lt.s32.totalorder %s266_s19, %s266_s19 }
  0x23   : > { %p1692_p6 = scmp.lt.s32.totalorder %s1683_s25, %s1683_s25 }
  0x24   : > { %p1686_p13 = pnand %p1684_p1, %p1648_p12 }
  0x25   : > { %p1693_p5 = por %p1692_p6, %p1691_p2 }
  0x26   : > { %p1687_p0 = pneg %p1686_p13 }
  0x27   : > { %1445 = dma.hbm_to_vmem [thread:$0]  (!%p1902_p11), %s2055_s1, 4096, %s250_s16, [#allocation7], %s1798_s21, %s1798_s21, %s1799_s22  }
  0x28   : > { %p1694_p10 = pnand %p1693_p5, %p1687_p0 }
  0x2a   : > { %1697 = shalt.err (!%p1694_p10)
}
  0x2b   : > { %s1800_s26 = smov 128   ;;  %s1801_s27 = smov 8  }
  0x2c   : > { %s2056_s3 = sld [smem:[#allocation14_spill]]  ;;  %s1925_s15 = sadd.s32 1, %s1794_s10  }
  0x2d   : > { %s32_s16 = ssub.s32 %s1794_s10, %s1925_s15  ;;  %s35_s18 = sadd.s32 1, %s1790_s9 }
  0x2e   : > { %p33_p1 = scmp.eq.s32.totalorder %s32_s16, 0  ;;  %p42_p2 = scmp.ne.s32.totalorder %s1790_s9, %s1786_s30 }
  0x2f   : > { %p43_p6 = scmp.eq.s32.totalorder %s1794_s10, 0  ;;  %p2057_p3 = scmp.eq.s32.totalorder %s1874_s6, 1 }
  0x30   : > { %s1934_s20 = scalar_select %p33_p1, %s1790_s9, %s35_s18  }
  0x31   : > { %p44_p12 = por %p43_p6, %p42_p2  ;;  %p1938_p7 = por %p2057_p3, %p42_p2 }
  0x32   : > { %1448 = dma.hbm_to_vmem [thread:$0]  (!%p1902_p11), %s2056_s3, 8192, %s266_s19, [#allocation7], %s1800_s26, %s1800_s26, %s1801_s27  }
  0x33   : > { %s2058_s21 = scalar_select %p1938_p7, 1, 0 }
  0x34   : > { %p1459_p9 = scmp.lt.s32.totalorder %s1794_s10, 2  ;;  %s288_s17 = sand.u32 1, %s1790_s9  }
  0x35   : > { %s1319_s22 = sshll.u32 %s288_s17, 3  ;;  %s1320_s19 = sshll.u32 %s1794_s10, 7 }
  0x36   : > { %s1948_s25 = scalar_lea.hbm %s2036_s0, %s1320_s19  ;;  %s292_s26 = scalar_lea.vmem [#allocation3], %s1319_s22 }
  0x37   : > { %s299_s27 = sshll.u32 %s292_s26, 4  ;;  %p1950_p11 = pnand %p1459_p9, %p44_p12  ;;  %s300_s27 = int_to_ptr.vmem [resolvable:$true] %s299_s27 }
  0x38   : > { %s289_s11 = scalar_lea.sflag [#allocation4], %s288_s17  ;;  %s1698_s16 = scalar_lea.hbm %s1948_s25, 128 }
  0x39   : > { %p1699_p13 = scmp.ne.s32.totalorder %s1948_s25, %s1698_s16  ;;  %p1700_p0 = pneg %p1950_p11 }
  0x3a   : > { %s1703_s23 = scalar_lea.hbm %s2036_s0, 256  ;;  %p1704_p1 = scmp.lt.s32.totalorder %s1948_s25, %s2036_s0 }
  0x3b   : > { %p1701_p5 = pnand %p1700_p0, %p1699_p13  ;;  %p1705_p2 = scmp.lt.s32.totalorder %s1703_s23, %s1698_s16 }
  0x3d   : > { %p1702_p10 = pneg %p1701_p5  ;;  %p1706_p6 = por %p1705_p2, %p1704_p1 }
  0x3f   : > { %p1707_p12 = pnand %p1706_p6, %p1702_p10 }
  0x41   : > { %1710 = shalt.err (!%p1707_p12)
}
  0x42   : > { %s1711_s26 = scalar_lea.vmem %s300_s27, 128  ;;  %s1802_s17 = smov [#allocation3]  }
  0x43   : > { %p1712_p3 = scmp.ne.s32.totalorder %s300_s27, %s1711_s26  ;;  %s1716_s1 = sshll.u32 %s1802_s17, 4  ;;  %s1717_s1 = int_to_ptr.vmem [resolvable:$false] %s1716_s1 }
  0x44   : > { %s1718_s3 = scalar_lea.vmem %s1717_s1, 256  ;;  %p1719_p13 = scmp.lt.s32.totalorder %s300_s27, %s1717_s1 }
  0x45   : > { %p1714_p9 = pnand %p1712_p3, %p1700_p0  ;;  %p1720_p5 = scmp.lt.s32.totalorder %s1718_s3, %s1711_s26 }
  0x47   : > { %p1715_p7 = pneg %p1714_p9  ;;  %p1721_p4 = por %p1720_p5, %p1719_p13 }
  0x49   : > { %p1722_p8 = pnand %p1721_p4, %p1715_p7 }
  0x4b   : > { %1725 = shalt.err (!%p1722_p8)
}
  0x4c   : > { %1452 = dma.hbm_to_vmem [thread:$0]  (!%p1950_p11), %s1948_s25, 128, %s300_s27, %s289_s11  }
  0x4d   : > { %p2060_p10 = scmp.ne.s32.totalorder %s2053_s14, 0 }
  0x4e   : > { %s1971_s16 = sand.u32 (!%p2060_p10), 1, %s1786_s30   ;;  %p2061_p0 = scmp.ne.s32.totalorder (!%p2060_p10), %s2051_s12, 0 }
  0x4f   : > { %308 = sbr.rel (%p2060_p10) target bundleno = 670 (0x29e), region = 48  ;;  %s1322_s18 = sshll.u32 (!%p2060_p10), %s1971_s16, 3 }
  0x50   : > { %s311_s19 = scalar_lea.sflag (!%p2060_p10), [#allocation4], %s1971_s16  ;;  %s1975_s1 = scalar_lea.vmem (!%p2060_p10), [#allocation3], %s1322_s18 }
  0x54   : > { %1769 = dma.done.wait (%p2061_p0), %s311_s19, 128  }
  0x55   : > { %1771 = vsyncadd (%p2061_p0), %s311_s19, 4294967168  ;;  %p2062_p4 = scmp.eq.s32.totalorder %s1874_s6, 0 }
  0x57   : > { %1773 = dma.done.wait (%p2062_p4), [#allocation7], 12288   ;;  %p2063_p8 = pmov %p2062_p4 }
  0x58   : > { %v1803_v1 = vmov 0   ;;  %v1502_v2 = vld [vmem:[#allocation6 + $0xe4] ss:$16 sps:$4 sm:$0xff]   ;;  %v1504_v3 = vld [vmem:[#allocation6 + $0xec] ss:$16 sps:$4 sm:$0xff]   ;;  %s1325_s27 = sshll.u32 %s1971_s16, 4 }
  0x59   : > { %1775 = vsyncadd (%p2063_p8), [#allocation7], 4294955008  ;;  %612 = vmatprep.mubr.bf16.mxu0 %v1803_v1  ;;  %653 = vmatprep.mubr.bf16.mxu1 %v1803_v1  ;;  %v1506_v4 = vld [vmem:[#allocation6 + $0xe0] ss:$16 sps:$4 sm:$0xff]   ;;  %v1507_v5 = vld [vmem:[#allocation6 + $0xe8] ss:$16 sps:$4 sm:$0xff]  }
  0x5a   : > { %580 = vmatprep.subr.bf16.mxu0 %v1502_v2  ;;  %621 = vmatprep.subr.bf16.mxu1 %v1504_v3  ;;  %v1508_v6 = vld [vmem:[#allocation6 + $0xc4] ss:$16 sps:$4 sm:$0xff]   ;;  %v1510_v7 = vld [vmem:[#allocation6 + $0xcc] ss:$16 sps:$4 sm:$0xff]   ;;  %v1512_v8 = vld [vmem:[#allocation6 + $0xc0] ss:$16 sps:$4 sm:$0xff]  }
  0x5b   : > { %581 = vmatpush1.bf16.msra.mxu0 %v1506_v4  ;;  %622 = vmatpush1.bf16.msra.mxu1 %v1507_v5  ;;  %v1513_v9 = vld [vmem:[#allocation6 + $0xc8] ss:$16 sps:$4 sm:$0xff]   ;;  %v1514_v10 = vld [vmem:[#allocation6 + $0xa4] ss:$16 sps:$4 sm:$0xff]   ;;  %v1516_v11 = vld [vmem:[#allocation6 + $0xac] ss:$16 sps:$4 sm:$0xff]  }
  0x5c   : > { %582 = vmatprep.subr.bf16.mxu0 %v1508_v6  ;;  %623 = vmatprep.subr.bf16.mxu1 %v1510_v7  ;;  %v1518_v12 = vld [vmem:[#allocation6 + $0xa0] ss:$16 sps:$4 sm:$0xff]   ;;  %v1519_v13 = vld [vmem:[#allocation6 + $0xa8] ss:$16 sps:$4 sm:$0xff]   ;;  %v1520_v14 = vld [vmem:[#allocation6 + $0x84] ss:$16 sps:$4 sm:$0xff]  }
  0x5d   : > { %v1522_v15 = vld [vmem:[#allocation6 + $0x8c] ss:$16 sps:$4 sm:$0xff]   ;;  %v1524_v16 = vld [vmem:[#allocation6 + $0x80] ss:$16 sps:$4 sm:$0xff]   ;;  %v1525_v17 = vld [vmem:[#allocation6 + $0x88] ss:$16 sps:$4 sm:$0xff]  }
  0x5e   : > { %v1526_v18 = vld [vmem:[#allocation6 + $0x64] ss:$16 sps:$4 sm:$0xff]   ;;  %v1528_v19 = vld [vmem:[#allocation6 + $0x6c] ss:$16 sps:$4 sm:$0xff]   ;;  %v1530_v20 = vld [vmem:[#allocation6 + $0x60] ss:$16 sps:$4 sm:$0xff]  }
  0x5f   : > { %583 = vmatpush1.bf16.msra.mxu0 %v1512_v8  ;;  %624 = vmatpush1.bf16.msra.mxu1 %v1513_v9  ;;  %v1531_v21 = vld [vmem:[#allocation6 + $0x68] ss:$16 sps:$4 sm:$0xff]   ;;  %v1532_v22 = vld [vmem:[#allocation6 + $0x44] ss:$16 sps:$4 sm:$0xff]   ;;  %v1534_v23 = vld [vmem:[#allocation6 + $0x4c] ss:$16 sps:$4 sm:$0xff]  }
  0x60   : > { %584 = vmatprep.subr.bf16.mxu0 %v1514_v10  ;;  %625 = vmatprep.subr.bf16.mxu1 %v1516_v11  ;;  %v1536_v24 = vld [vmem:[#allocation6 + $0x40] ss:$16 sps:$4 sm:$0xff]   ;;  %v1537_v25 = vld [vmem:[#allocation6 + $0x48] ss:$16 sps:$4 sm:$0xff]   ;;  %v1538_v26 = vld [vmem:[#allocation6 + $0x24] ss:$16 sps:$4 sm:$0xff]  }
  0x61   : > { %v1540_v27 = vld [vmem:[#allocation6 + $0x2c] ss:$16 sps:$4 sm:$0xff]   ;;  %v1542_v28 = vld [vmem:[#allocation6 + $0x20] ss:$16 sps:$4 sm:$0xff]   ;;  %v1543_v29 = vld [vmem:[#allocation6 + $0x28] ss:$16 sps:$4 sm:$0xff]  }
  0x62   : > { %v1544_v30 = vld [vmem:[#allocation6 + $0x4] ss:$16 sps:$4 sm:$0xff]   ;;  %v1546_v31 = vld [vmem:[#allocation6 + $0xc] ss:$16 sps:$4 sm:$0xff]   ;;  %v1548_v32 = vld [vmem:[#allocation6] ss:$16 sps:$4 sm:$0xff]  }
  0x63   : > { %585 = vmatpush1.bf16.msra.mxu0 %v1518_v12  ;;  %626 = vmatpush1.bf16.msra.mxu1 %v1519_v13  ;;  %v1549_v33 = vld [vmem:[#allocation6 + $0x8] ss:$16 sps:$4 sm:$0xff]   ;;  %v1552_v35 = vld [vmem:[#allocation8 + $0x74] ss:$8 sps:$4 sm:$0xff]   ;;  %v1558_v40 = vld [vmem:[#allocation8 + $0x64] ss:$8 sps:$4 sm:$0xff]  }
  0x64   : > { %586 = vmatprep.subr.bf16.mxu0 %v1520_v14  ;;  %627 = vmatprep.subr.bf16.mxu1 %v1522_v15  ;;  %v364_v34 = vld [vmem:[%s1975_s1] sm:$0xff]  ;;  %v1561_v41 = vld [vmem:[#allocation8 + $0x164] ss:$8 sps:$4 sm:$0xff]   ;;  %v1556_v42 = vld [vmem:[#allocation8 + $0x60] ss:$8 sps:$4 sm:$0xff]   ;;  %s358_s23 = scalar_lea.vmem [#allocation9], %s1325_s27 }
  0x65   : > { %v1555_v36 = vld [vmem:[#allocation8 + $0x174] ss:$8 sps:$4 sm:$0xff]   ;;  %v365_v37 = vpack.c.bf16 %v364_v34, %v364_v34  ;;  %v1550_v38 = vld [vmem:[#allocation8 + $0x70] ss:$8 sps:$4 sm:$0xff]   ;;  %v1559_v43 = vld [vmem:[#allocation8 + $0x160] ss:$8 sps:$4 sm:$0xff]  }
  0x66   : > { %v1553_v39 = vld [vmem:[#allocation8 + $0x170] ss:$8 sps:$4 sm:$0xff]   ;;  %v1564_v44 = vld [vmem:[#allocation8 + $0x54] ss:$8 sps:$4 sm:$0xff]   ;;  %v1570_v48 = vld [vmem:[#allocation8 + $0x44] ss:$8 sps:$4 sm:$0xff]  }
  0x67   : > { %587 = vmatpush1.bf16.msra.mxu0 %v1524_v16  ;;  %628 = vmatpush1.bf16.msra.mxu1 %v1525_v17  ;;  %v1567_v45 = vld [vmem:[#allocation8 + $0x154] ss:$8 sps:$4 sm:$0xff]   ;;  %v1562_v46 = vld [vmem:[#allocation8 + $0x50] ss:$8 sps:$4 sm:$0xff]   ;;  %v1573_v49 = vld [vmem:[#allocation8 + $0x144] ss:$8 sps:$4 sm:$0xff]  }
  0x68   : > { %588 = vmatprep.subr.bf16.mxu0 %v1526_v18  ;;  %629 = vmatprep.subr.bf16.mxu1 %v1528_v19  ;;  %v1565_v47 = vld [vmem:[#allocation8 + $0x150] ss:$8 sps:$4 sm:$0xff]   ;;  %v1568_v50 = vld [vmem:[#allocation8 + $0x40] ss:$8 sps:$4 sm:$0xff]   ;;  %v1576_v52 = vld [vmem:[#allocation8 + $0x34] ss:$8 sps:$4 sm:$0xff]  }
  0x69   : > { %v1571_v51 = vld [vmem:[#allocation8 + $0x140] ss:$8 sps:$4 sm:$0xff]   ;;  %v1579_v53 = vld [vmem:[#allocation8 + $0x134] ss:$8 sps:$4 sm:$0xff]   ;;  %v1574_v54 = vld [vmem:[#allocation8 + $0x30] ss:$8 sps:$4 sm:$0xff]  }
  0x6a   : > { %v1577_v55 = vld [vmem:[#allocation8 + $0x130] ss:$8 sps:$4 sm:$0xff]   ;;  %v1582_v56 = vld [vmem:[#allocation8 + $0x24] ss:$8 sps:$4 sm:$0xff]   ;;  %v1580_v58 = vld [vmem:[#allocation8 + $0x20] ss:$8 sps:$4 sm:$0xff]  }
  0x6b   : > { %589 = vmatpush1.bf16.msra.mxu0 %v1530_v20  ;;  %630 = vmatpush1.bf16.msra.mxu1 %v1531_v21  ;;  %v1585_v57 = vld [vmem:[#allocation8 + $0x124] ss:$8 sps:$4 sm:$0xff]   ;;  %v1583_v59 = vld [vmem:[#allocation8 + $0x120] ss:$8 sps:$4 sm:$0xff]   ;;  %v1588_v60 = vld [vmem:[#allocation8 + $0x14] ss:$8 sps:$4 sm:$0xff]  }
  0x6c   : > { %590 = vmatprep.subr.bf16.mxu0 %v1532_v22  ;;  %631 = vmatprep.subr.bf16.mxu1 %v1534_v23  ;;  %v1591_v61 = vld [vmem:[#allocation8 + $0x114] ss:$8 sps:$4 sm:$0xff]   ;;  %v1586_v62 = vld [vmem:[#allocation8 + $0x10] ss:$8 sps:$4 sm:$0xff]   ;;  %v1594_v0 = vld [vmem:[#allocation8 + $0x4] ss:$8 sps:$4 sm:$0xff]  }
  0x6d   : > { %v1589_v63 = vld [vmem:[#allocation8 + $0x110] ss:$8 sps:$4 sm:$0xff]   ;;  %v1597_v1 = vld [vmem:[#allocation8 + $0x104] ss:$8 sps:$4 sm:$0xff]   ;;  %v1592_v2 = vld [vmem:[#allocation8] ss:$8 sps:$4 sm:$0xff]  }
  0x6e   : > { %v1595_v3 = vld [vmem:[#allocation8 + $0x100] ss:$8 sps:$4 sm:$0xff]   ;;  %v1600_v4 = vld [vmem:[#allocation8 + $0xf4] ss:$8 sps:$4 sm:$0xff]   ;;  %v1598_v6 = vld [vmem:[#allocation8 + $0xf0] ss:$8 sps:$4 sm:$0xff]  }
  0x6f   : > { %591 = vmatpush1.bf16.msra.mxu0 %v1536_v24  ;;  %632 = vmatpush1.bf16.msra.mxu1 %v1537_v25  ;;  %v1603_v5 = vld [vmem:[#allocation8 + $0x1f4] ss:$8 sps:$4 sm:$0xff]   ;;  %v1601_v7 = vld [vmem:[#allocation8 + $0x1f0] ss:$8 sps:$4 sm:$0xff]   ;;  %v1606_v8 = vld [vmem:[#allocation8 + $0xe4] ss:$8 sps:$4 sm:$0xff]  }
  0x70   : > { %592 = vmatprep.subr.bf16.mxu0 %v1538_v26  ;;  %633 = vmatprep.subr.bf16.mxu1 %v1540_v27  ;;  %v1609_v9 = vld [vmem:[#allocation8 + $0x1e4] ss:$8 sps:$4 sm:$0xff]   ;;  %v1604_v10 = vld [vmem:[#allocation8 + $0xe0] ss:$8 sps:$4 sm:$0xff]   ;;  %v1612_v12 = vld [vmem:[#allocation8 + $0xd4] ss:$8 sps:$4 sm:$0xff]  }
  0x71   : > { %v1607_v11 = vld [vmem:[#allocation8 + $0x1e0] ss:$8 sps:$4 sm:$0xff]   ;;  %v1615_v13 = vld [vmem:[#allocation8 + $0x1d4] ss:$8 sps:$4 sm:$0xff]   ;;  %v1610_v14 = vld [vmem:[#allocation8 + $0xd0] ss:$8 sps:$4 sm:$0xff]  }
  0x72   : > { %v1613_v15 = vld [vmem:[#allocation8 + $0x1d0] ss:$8 sps:$4 sm:$0xff]   ;;  %v1618_v16 = vld [vmem:[#allocation8 + $0xc4] ss:$8 sps:$4 sm:$0xff]   ;;  %v1616_v18 = vld [vmem:[#allocation8 + $0xc0] ss:$8 sps:$4 sm:$0xff]  }
  0x73   : > { %593 = vmatpush1.bf16.msra.mxu0 %v1542_v28  ;;  %634 = vmatpush1.bf16.msra.mxu1 %v1543_v29  ;;  %v1621_v17 = vld [vmem:[#allocation8 + $0x1c4] ss:$8 sps:$4 sm:$0xff]   ;;  %v1619_v19 = vld [vmem:[#allocation8 + $0x1c0] ss:$8 sps:$4 sm:$0xff]   ;;  %v1624_v20 = vld [vmem:[#allocation8 + $0xb4] ss:$8 sps:$4 sm:$0xff]  }
  0x74   : > { %594 = vmatprep.subr.bf16.mxu0 %v1544_v30  ;;  %635 = vmatprep.subr.bf16.mxu1 %v1546_v31  ;;  %v1627_v21 = vld [vmem:[#allocation8 + $0x1b4] ss:$8 sps:$4 sm:$0xff]   ;;  %v1622_v22 = vld [vmem:[#allocation8 + $0xb0] ss:$8 sps:$4 sm:$0xff]   ;;  %v1630_v24 = vld [vmem:[#allocation8 + $0xa4] ss:$8 sps:$4 sm:$0xff]  }
  0x75   : > { %v1625_v23 = vld [vmem:[#allocation8 + $0x1b0] ss:$8 sps:$4 sm:$0xff]   ;;  %v1633_v25 = vld [vmem:[#allocation8 + $0x1a4] ss:$8 sps:$4 sm:$0xff]   ;;  %v1628_v26 = vld [vmem:[#allocation8 + $0xa0] ss:$8 sps:$4 sm:$0xff]  }
  0x76   : > { %v1631_v27 = vld [vmem:[#allocation8 + $0x1a0] ss:$8 sps:$4 sm:$0xff]   ;;  %v1636_v28 = vld [vmem:[#allocation8 + $0x94] ss:$8 sps:$4 sm:$0xff]   ;;  %v1634_v30 = vld [vmem:[#allocation8 + $0x90] ss:$8 sps:$4 sm:$0xff]  }
  0x77   : > { %595 = vmatpush1.bf16.msra.mxu0 %v1548_v32  ;;  %636 = vmatpush1.bf16.msra.mxu1 %v1549_v33  ;;  %v1639_v29 = vld [vmem:[#allocation8 + $0x194] ss:$8 sps:$4 sm:$0xff]   ;;  %v1637_v31 = vld [vmem:[#allocation8 + $0x190] ss:$8 sps:$4 sm:$0xff]   ;;  %v1642_v32 = vld [vmem:[#allocation8 + $0x84] ss:$8 sps:$4 sm:$0xff]  }
  0x78   : > { %1066 = vmatprep.subr.bf16.mxu0 %v1552_v35  ;;  %1107 = vmatprep.subr.bf16.mxu1 %v1555_v36  ;;  %v1645_v33 = vld [vmem:[#allocation8 + $0x184] ss:$8 sps:$4 sm:$0xff]   ;;  %v1640_v34 = vld [vmem:[#allocation8 + $0x80] ss:$8 sps:$4 sm:$0xff]   ;;  %v400_v36 = vlaneseq  ;;  %s1429_s24 = sshll.u32 %s1874_s6, 8  ;;  %s1201_s22 = sshll.u32 %s358_s23, 4  ;;  %s1202_s22 = int_to_ptr.vmem [resolvable:$true] %s1201_s22 }
  0x79   : > { %v1643_v35 = vld [vmem:[#allocation8 + $0x180] ss:$8 sps:$4 sm:$0xff]   ;;  %s1199_s18 = scalar_lea.hbm %s2044_s8, %s1429_s24  ;;  %s1184_s19 = scalar_lea.sflag [#allocation5], %s1971_s16 }
  0x7a   : > { %613 = vmatmul.mubr.bf16.vlgmr.msra.gmra.mxu0 %v365_v37  ;;  %654 = vmatmul.mubr.bf16.vlgmr.msra.gmra.mxu1 %v365_v37  ;;  %v401_v37 = vshrl.u32 %v400_v36, 7  ;;  %s1726_s1 = scalar_lea.vmem %s1202_s22, 256  ;;  %p2064_p11 = scmp.ne.s32.totalorder %s2058_s21, 0 }
  0x7b   : > { %1067 = vmatpush1.bf16.msra.mxu0 %v1550_v38  ;;  %1108 = vmatpush1.bf16.msra.mxu1 %v1553_v39  ;;  %p1727_p7 = scmp.ne.s32.totalorder %s1202_s22, %s1726_s1  ;;  %s1804_s3 = smov [#allocation9]  }
  0x7c   : > { %1068 = vmatprep.subr.bf16.mxu0 %v1558_v40  ;;  %1109 = vmatprep.subr.bf16.mxu1 %v1561_v41  ;;  %v402_v38 = vsub.s32 0, %v401_v37  ;;  %v410_v39 = vsub.s32 2, %v401_v37  ;;  %v398_v40 = vld [vmem:[%s2038_s2] sm:$0xf]  ;;  %v406_v41 = vsub.s32 1, %v401_v37  ;;  %s1730_s12 = sshll.u32 %s1804_s3, 4  ;;  %s1731_s12 = int_to_ptr.vmem [resolvable:$false] %s1730_s12 }
  0x7d   : > { %p1728_p1 = pnand %p1727_p7, %p2064_p11  ;;  %s1732_s14 = scalar_lea.vmem %s1731_s12, 512 }
  0x7e   : > { %p1733_p6 = scmp.lt.s32.totalorder %s1202_s22, %s1731_s12  ;;  %p1734_p12 = scmp.lt.s32.totalorder %s1732_s14, %s1726_s1 }
  0x7f   : > { %1069 = vmatpush1.bf16.msra.mxu0 %v1556_v42  ;;  %1110 = vmatpush1.bf16.msra.mxu1 %v1559_v43  ;;  %v414_v42 = vsub.s32 3, %v401_v37  ;;  %v403_v43 = vrot.slane %v398_v40, %v402_v38  ;;  %p1729_p2 = pneg %p1728_p1 }
  0x80   : > { %1070 = vmatprep.subr.bf16.mxu0 %v1564_v44  ;;  %1111 = vmatprep.subr.bf16.mxu1 %v1567_v45  ;;  %v411_v44 = vrot.slane %v398_v40, %v410_v39  ;;  %v407_v45 = vrot.slane %v398_v40, %v406_v41  ;;  %p1735_p3 = por %p1734_p12, %p1733_p6 }
  0x82   : > { %p1736_p9 = pnand %p1735_p3, %p1729_p2 }
  0x83   : > { %1071 = vmatpush1.bf16.msra.mxu0 %v1562_v46  ;;  %1112 = vmatpush1.bf16.msra.mxu1 %v1565_v47  ;;  %v415_v46 = vrot.slane %v398_v40, %v414_v42 }
  0x84   : > { %1072 = vmatprep.subr.bf16.mxu0 %v1570_v48  ;;  %1113 = vmatprep.subr.bf16.mxu1 %v1573_v49 }
  0x87   : > { %1073 = vmatpush1.bf16.msra.mxu0 %v1568_v50  ;;  %1114 = vmatpush1.bf16.msra.mxu1 %v1571_v51 }
  0x88   : > { %1074 = vmatprep.subr.bf16.mxu0 %v1576_v52  ;;  %1115 = vmatprep.subr.bf16.mxu1 %v1579_v53 }
  0x8b   : > { %1075 = vmatpush1.bf16.msra.mxu0 %v1574_v54  ;;  %1116 = vmatpush1.bf16.msra.mxu1 %v1577_v55 }
  0x8c   : > { %1076 = vmatprep.subr.bf16.mxu0 %v1582_v56  ;;  %1117 = vmatprep.subr.bf16.mxu1 %v1585_v57 }
  0x8f   : > { %1077 = vmatpush1.bf16.msra.mxu0 %v1580_v58  ;;  %1118 = vmatpush1.bf16.msra.mxu1 %v1583_v59 }
  0x90   : > { %1078 = vmatprep.subr.bf16.mxu0 %v1588_v60  ;;  %1119 = vmatprep.subr.bf16.mxu1 %v1591_v61 }
  0x93   : > { %1079 = vmatpush1.bf16.msra.mxu0 %v1586_v62  ;;  %1120 = vmatpush1.bf16.msra.mxu1 %v1589_v63 }
  0x94   : > { %1080 = vmatprep.subr.bf16.mxu0 %v1594_v0  ;;  %1121 = vmatprep.subr.bf16.mxu1 %v1597_v1 }
  0x97   : > { %1081 = vmatpush1.bf16.msra.mxu0 %v1592_v2  ;;  %1122 = vmatpush1.bf16.msra.mxu1 %v1595_v3  ;;  %v734_v3 = vld [vmem:[%s2040_s4] sm:$0x3] }
  0x98   : > { %1082 = vmatprep.subr.bf16.mxu0 %v1600_v4  ;;  %1123 = vmatprep.subr.bf16.mxu1 %v1603_v5  ;;  %v739_v4 = vrot.slane %v734_v3, %v402_v38  ;;  %v743_v5 = vrot.slane %v734_v3, %v406_v41 }
  0x9b   : > { %1083 = vmatpush2.bf16.msra.mxu0 %v1598_v6  ;;  %1124 = vmatpush2.bf16.msra.mxu1 %v1601_v7 }
  0x9c   : > { %1084 = vmatprep.subr.bf16.mxu0 %v1606_v8  ;;  %1125 = vmatprep.subr.bf16.mxu1 %v1609_v9 }
  0x9f   : > { %1085 = vmatpush2.bf16.msra.mxu0 %v1604_v10  ;;  %1126 = vmatpush2.bf16.msra.mxu1 %v1607_v11  ;;  %v1150_v11 = vld [vmem:[%s2041_s5] sm:$0x3] }
  0xa0   : > { %1086 = vmatprep.subr.bf16.mxu0 %v1612_v12  ;;  %1127 = vmatprep.subr.bf16.mxu1 %v1615_v13 }
  0xa3   : > { %1087 = vmatpush2.bf16.msra.mxu0 %v1610_v14  ;;  %1128 = vmatpush2.bf16.msra.mxu1 %v1613_v15 }
  0xa4   : > { %1088 = vmatprep.subr.bf16.mxu0 %v1618_v16  ;;  %1129 = vmatprep.subr.bf16.mxu1 %v1621_v17 }
  0xa7   : > { %1089 = vmatpush2.bf16.msra.mxu0 %v1616_v18  ;;  %1130 = vmatpush2.bf16.msra.mxu1 %v1619_v19  ;;  %v1155_v18 = vrot.slane %v1150_v11, %v402_v38  ;;  %v1159_v19 = vrot.slane %v1150_v11, %v406_v41 }
  0xa8   : > { %1090 = vmatprep.subr.bf16.mxu0 %v1624_v20  ;;  %1131 = vmatprep.subr.bf16.mxu1 %v1627_v21 }
  0xab   : > { %1091 = vmatpush2.bf16.msra.mxu0 %v1622_v22  ;;  %1132 = vmatpush2.bf16.msra.mxu1 %v1625_v23 }
  0xac   : > { %1092 = vmatprep.subr.bf16.mxu0 %v1630_v24  ;;  %1133 = vmatprep.subr.bf16.mxu1 %v1633_v25 }
  0xaf   : > { %1093 = vmatpush2.bf16.msra.mxu0 %v1628_v26  ;;  %1134 = vmatpush2.bf16.msra.mxu1 %v1631_v27 }
  0xb0   : > { %1094 = vmatprep.subr.bf16.mxu0 %v1636_v28  ;;  %1135 = vmatprep.subr.bf16.mxu1 %v1639_v29 }
  0xb3   : > { %1095 = vmatpush2.bf16.msra.mxu0 %v1634_v30  ;;  %1136 = vmatpush2.bf16.msra.mxu1 %v1637_v31 }
  0xb4   : > { %1096 = vmatprep.subr.bf16.mxu0 %v1642_v32  ;;  %1137 = vmatprep.subr.bf16.mxu1 %v1645_v33 }
  0xb7   : > { %1097 = vmatpush2.bf16.msra.mxu0 %v1640_v34  ;;  %1138 = vmatpush2.bf16.msra.mxu1 %v1643_v35 }
 0x13a   : > { %v614_v47 = vpop.f32.mrf.mxu0  ;;  %v655_v48 = vpop.f32.mrf.mxu1 }
 0x13b   : > { %v615_v49 = vadd.f32 %v614_v47, %v403_v43  ;;  %v656_v50 = vadd.f32 %v655_v48, %v411_v44 }
 0x13c   : > { %v616_v51 = vpop.f32.mrf.mxu0  ;;  %v657_v52 = vpop.f32.mrf.mxu1 }
 0x13d   : > { %v664_v53 = vmax.f32 %v656_v50, 0.0  ;;  %v617_v54 = vadd.f32 %v616_v51, %v407_v45  ;;  %v658_v55 = vadd.f32 %v657_v52, %v415_v46  ;;  %v662_v56 = vmax.f32 %v615_v49, 0.0 }
 0x13e   : > { %v618_v57 = vpop.f32.mrf.mxu0  ;;  %v659_v58 = vpop.f32.mrf.mxu1 }
 0x13f   : > { %v663_v59 = vmax.f32 %v617_v54, 0.0  ;;  %v665_v60 = vmax.f32 %v658_v55, 0.0  ;;  %v668_v61 = vpack.c.bf16 %v664_v53, %v664_v53  ;;  %v666_v2 = vpack.c.bf16 %v662_v56, %v662_v56 }
 0x140   : > { %v619_v62 = vpop.f32.mrf.mxu0  ;;  %v660_v63 = vpop.f32.mrf.mxu1 }
 0x141   : > { %v667_v0 = vpack.c.bf16 %v663_v59, %v663_v59  ;;  %v669_v1 = vpack.c.bf16 %v665_v60, %v665_v60 }
 0x143   : > { %1098 = vmatprep.mubr.bf16.mxu0 %v667_v0  ;;  %1139 = vmatprep.mubr.bf16.mxu1 %v669_v1 }
 0x144   : > { %1099 = vmatmul.mubr.bf16.vlgmr.msra.gmra.mxu0 %v666_v2  ;;  %1140 = vmatmul.mubr.bf16.vlgmr.msra.gmra.mxu1 %v668_v61 }
 0x204   : > { %v1100_v6 = vpop.f32.mrf.mxu0  ;;  %v1141_v7 = vpop.f32.mrf.mxu1 }
 0x205   : > { %v1101_v8 = vadd.f32 %v1100_v6, %v739_v4 }
 0x206   : > { %v1102_v9 = vpop.f32.mrf.mxu0  ;;  %v1143_v10 = vpop.f32.mrf.mxu1 }
 0x207   : > { %v1142_v12 = vadd.f32 %v1141_v7, %v1101_v8  ;;  %v1103_v13 = vadd.f32 %v1102_v9, %v743_v5 }
 0x208   : > { %v1104_v14 = vpop.f32.mrf.mxu0  ;;  %v1145_v15 = vpop.f32.mrf.mxu1 }
 0x209   : > { %v1148_v16 = vmax.f32 %v1142_v12, 0.0  ;;  %v1144_v17 = vadd.f32 %v1143_v10, %v1103_v13 }
 0x20a   : > { %v1105_v20 = vpop.f32.mrf.mxu0  ;;  %v1146_v21 = vpop.f32.mrf.mxu1 }
 0x20b   : > { %1175 = vst [vmem:[%s358_s23] sm:$0xff] %v1148_v16  ;;  %v1149_v22 = vmax.f32 %v1144_v17, 0.0  ;;  %v1162_v23 = vmul.f32 %v1155_v18, %v1148_v16 }
 0x20d   : > { %1176 = vst [vmem:[%s358_s23 + $0x8] sm:$0xff] %v1149_v22  ;;  %v1163_v24 = vmul.f32 %v1159_v19, %v1149_v22 }
 0x20f   : > { %v1164_v25 = vadd.f32 %v1163_v24, %v1162_v23 }
 0x211   : > { %1165 = vadd.xlane.f32.xlu0 %v1164_v25 }
 0x212   : > { %1739 = shalt.err (!%p1736_p9)
}
 0x213   : > { %s1740_s25 = scalar_lea.hbm %s1199_s18, 256  ;;  %s1744_s28 = scalar_lea.hbm %s2044_s8, 512 }
 0x214   : > { %p1741_p13 = scmp.ne.s32.totalorder %s1199_s18, %s1740_s25  ;;  %p1745_p0 = scmp.lt.s32.totalorder %s1199_s18, %s2044_s8 }
 0x215   : > { %p1746_p4 = scmp.lt.s32.totalorder %s1744_s28, %s1740_s25 }
 0x216   : > { %p1742_p5 = pnand %p1741_p13, %p2064_p11 }
 0x217   : > { %p1747_p8 = por %p1746_p4, %p1745_p0 }
 0x218   : > { %p1743_p10 = pneg %p1742_p5 }
 0x21a   : > { %p1748_p7 = pnand %p1747_p8, %p1743_p10 }
 0x21c   : > { %1751 = shalt.err (!%p1748_p7)
}
 0x21d   : > { %1440 = dma.vmem_to_hbm [thread:$0]  (%p2064_p11), %s1202_s22, 256, %s1199_s18, %s1184_s19   ;;  %v1423_v26 = vld [vmem:[#allocation2] ss:$0 sm:$0xff]  ;;  %vm1177_vm0 = vcmask 7168  }
 0x21e   : > { %p359_p1 = scmp.lt.s32.totalorder %s1874_s6, 1 }
 0x220   : > { %s2072_s6 = smov (!%p359_p1, %s1874_s6), 1 }
 0x221   : > { %s1326_s24 = sshll.u32 %s2072_s6, 3 }
 0x222   : > { %s362_s1 = scalar_lea.vmem %s2043_s7, %s1326_s24 }
 0x29a   : > { %v1166_v27 = vpop.xlane.xlu0 %1165 }
 0x29b   : > { %v1174_v28 = vadd.f32 %v1423_v26, %v1166_v27 }
 0x29d   : > { %1178 = vst.msk [vmem:[%s362_s1] sm:$0xff] %vm1177_vm0, %v1174_v28 }
 0x29e PF: > { %s1220_s21 = sand.u32 1, %s1782_s29   ;;  %p2065_p2 = scmp.ne.s32.totalorder %s2052_s13, 0 }
 0x29f   : > { %p2066_p6 = scmp.ge.s32.totalorder %s1794_s10, 2  ;;  %s1221_s22 = scalar_lea.sflag [#allocation5], %s1220_s21 }
 0x2a1   : > { %p1454_p11 = pnand %p2066_p6, %p2065_p2 }
 0x2a3   : > { %p1455_p12 = pneg %p1454_p11 }
 0x2a5   : > { %1777 = dma.done.wait (%p1455_p12), %s1221_s22, 256  }
 0x2a6   : > { %1779 = vsyncadd (%p1455_p12), %s1221_s22, 4294967040  ;;  %p25_p3 = scmp.ge.s32.totalorder %s1925_s15, 4   ;;  %s2067_s29 = smov %s1786_s30 }
 0x2a7   : > { %s2068_s30 = smov %s1790_s9  ;;  %s2069_s9 = smov %s1934_s20 }
 0x2a8   : > { %s2070_s10 = smov %s1925_s15  ;;  %27 = sbr.rel (!%p25_p3) target bundleno = 9 (0x9), region = 113 }
 0x2ad   :  { %1226 = vsyncpa [#allocation4], 1 }
 0x2ae   :  { %1228 = vsyncpa [#allocation4 + $0x1], 1 }
 0x2af   :  { %1229 = vsyncpa [#allocation7], 1 }
 0x2b0   :  { %1230 = vsyncpa [#allocation5], 1 }
 0x2b1   :  { %1232 = vsyncpa [#allocation5 + $0x1], 1 }

</bundles_post_ra>
